<compile_context>
chip_gen: v7x
topology: tpu7x:2x2x1
jax: 0.10.0
libtpu: 0.0.40
codegen_flags: <defaults>
</compile_context>

<pallas_src>
from functools import partial

import jax
import jax.numpy as jnp
import numpy as np
from jax.experimental import pallas as pl
from jax.experimental.pallas import tpu as pltpu

_BN_EPS = 1e-5
_TARGET_X_BLOCK_BYTES = 2 << 20   # aim ~2 MiB of x per grid step
_VMEM_BLOCK_BUDGET = 24 << 20     # double-buffered x + out blocks (v7x 64 MiB-safe)
_VMEM_LIMIT_BYTES = 48 << 20      # scoped VMEM limit handed to Mosaic


# ---------------------------------------------------------------------------
# tile sizing
# ---------------------------------------------------------------------------
def _round_down_128(x: int) -> int:
    return (x // 128) * 128


def _pick_hw_tile(hw: int, c_in: int, c_out: int, target_block_bytes: int) -> int:
    """Largest multiple-of-128 HW tile keeping the x block near the byte target
    and the double-buffered x + out blocks under the VMEM budget."""
    tile = max(1, target_block_bytes // (4 * c_in))
    tile = min(tile, _VMEM_BLOCK_BUDGET // (2 * 4 * (c_in + c_out)))
    tile = max(128, _round_down_128(tile))
    if tile >= hw:
        return hw                   # single full-extent block (always legal)
    return tile


# ---------------------------------------------------------------------------
# kernels
# ---------------------------------------------------------------------------
def _stats_kernel(x_ref, sum_ref, gram_ref, *, hw, hw_tile, tiles_per_half):
    """Pass 1: accumulate per-input-channel sum(x) and Gram x @ x^T over HW tiles."""
    @pl.when(pl.program_id(1) == 0)
    def _init():
        sum_ref[...] = jnp.zeros_like(sum_ref)
        gram_ref[...] = jnp.zeros_like(gram_ref)

    x = x_ref[...]                                             # (Cin, hw_tile)
    if hw % hw_tile != 0:
        # cdiv grid: zero out the padded columns of the ragged last tile.
        col0 = (pl.program_id(0) * tiles_per_half + pl.program_id(1)) * hw_tile
        col = col0 + jax.lax.broadcasted_iota(jnp.int32, x.shape, 1)
        x = jnp.where(col < hw, x, jnp.zeros_like(x))

    sum_ref[0] = sum_ref[0] + jnp.sum(x.astype(jnp.float32), axis=1, keepdims=True)
    gram_ref[0] = gram_ref[0] + jax.lax.dot_general(
        x, x, (((1,), (1,)), ((), ())), preferred_element_type=jnp.float32)


def _align_kernel(x_ref, w_ref, sum_ref, gram_ref, gamma_ref, beta_ref, o_ref,
                  *, inv_n, eps):
    """Pass 2: fold BN stats into (scale, shift) in-kernel; emit scale*(W@x)+shift."""
    w = w_ref[...].astype(jnp.float32)                         # (Cout, Cin)
    sum_x = jnp.sum(sum_ref[...], axis=0)                      # (Cin, 1)   merge split halves
    gram = jnp.sum(gram_ref[...], axis=0)                      # (Cin, Cin)

    mean = jax.lax.dot_general(w, sum_x, (((1,), (0,)), ((), ())),
                               preferred_element_type=jnp.float32) * inv_n   # E[Wx]
    ex2 = jnp.sum(jax.lax.dot_general(w, gram, (((1,), (0,)), ((), ())),
                                      preferred_element_type=jnp.float32) * w,
                  axis=1, keepdims=True) * inv_n                              # E[(Wx)^2]
    var = jnp.maximum(ex2 - mean * mean, 0.0)
    scale = gamma_ref[...] * jax.lax.rsqrt(var + eps)          # (Cout, 1)
    shift = beta_ref[...] - scale * mean                       # conv bias cancels exactly

    y = jax.lax.dot_general(w_ref[...], x_ref[...], (((1,), (0,)), ((), ())),
                            preferred_element_type=jnp.float32)  # (Cout, hw_tile)
    o_ref[...] = (y * scale + shift).astype(o_ref.dtype)


# ---------------------------------------------------------------------------
# per-branch wrapper (1x1 conv + BatchNorm2d with batch stats)
# ---------------------------------------------------------------------------
def _align_branch(feat, conv_w, gamma, beta, *, compute_dtype, target_block_bytes):
    c_in, h, w = feat.shape
    c_out = conv_w.shape[0]
    hw = h * w

    x = feat.reshape(c_in, hw).astype(compute_dtype)           # (Cin, HW), no padding
    wmat = conv_w.reshape(c_out, c_in).astype(compute_dtype)   # (Cout, Cin)
    gamma2 = gamma.reshape(c_out, 1).astype(jnp.float32)
    beta2 = beta.reshape(c_out, 1).astype(jnp.float32)

    hw_tile = _pick_hw_tile(hw, c_in, c_out, target_block_bytes)
    n_tiles = pl.cdiv(hw, hw_tile)
    # 2-way "parallel" split of the stats reduction keeps both v7x TensorCores
    # busy; only used when it divides the tile count so no block is fully OOB.
    split = 2 if (n_tiles >= 2 and n_tiles % 2 == 0) else 1
    tiles_per_half = n_tiles // split

    # ---- pass 1: per-channel sum(x) and Gram x @ x^T over all HW tiles ----
    sum_x, gram = pl.pallas_call(
        partial(_stats_kernel, hw=hw, hw_tile=hw_tile, tiles_per_half=tiles_per_half),
        out_shape=(jax.ShapeDtypeStruct((split, c_in, 1), jnp.float32),
                   jax.ShapeDtypeStruct((split, c_in, c_in), jnp.float32)),
        grid=(split, tiles_per_half),
        in_specs=[pl.BlockSpec((c_in, hw_tile),
                               lambda s, t: (0, s * tiles_per_half + t))],
        out_specs=(pl.BlockSpec((1, c_in, 1), lambda s, t: (s, 0, 0)),
                   pl.BlockSpec((1, c_in, c_in), lambda s, t: (s, 0, 0))),
        compiler_params=pltpu.CompilerParams(
            dimension_semantics=("parallel", "arbitrary"),
            vmem_limit_bytes=_VMEM_LIMIT_BYTES),
    )(x)

    # ---- pass 2: fused matmul + in-kernel BN fold, lane-dense output ----
    out = pl.pallas_call(
        partial(_align_kernel, inv_n=1.0 / hw, eps=_BN_EPS),
        out_shape=jax.ShapeDtypeStruct((c_out, hw), jnp.float32),
        grid=(n_tiles,),
        in_specs=[pl.BlockSpec((c_in, hw_tile), lambda t: (0, t)),
                  pl.BlockSpec((c_out, c_in), lambda t: (0, 0)),
                  pl.BlockSpec((split, c_in, 1), lambda t: (0, 0, 0)),
                  pl.BlockSpec((split, c_in, c_in), lambda t: (0, 0, 0)),
                  pl.BlockSpec((c_out, 1), lambda t: (0, 0)),
                  pl.BlockSpec((c_out, 1), lambda t: (0, 0))],
        out_specs=pl.BlockSpec((c_out, hw_tile), lambda t: (0, t)),
        compiler_params=pltpu.CompilerParams(
            dimension_semantics=("parallel",),
            vmem_limit_bytes=_VMEM_LIMIT_BYTES),
    )(x, wmat, sum_x, gram, gamma2, beta2)

    return out.reshape(c_out, h, w)


@partial(jax.jit, static_argnames=("compute_dtype", "target_block_bytes"))
def _forward(camera_feat, lidar_feat, cam_w, lid_w, gamma, beta, *,
             compute_dtype, target_block_bytes):
    out_cam = _align_branch(camera_feat, cam_w, gamma, beta,
                            compute_dtype=compute_dtype,
                            target_block_bytes=target_block_bytes)
    out_lid = _align_branch(lidar_feat, lid_w, gamma, beta,
                            compute_dtype=compute_dtype,
                            target_block_bytes=target_block_bytes)
    return out_cam, out_lid


# ---------------------------------------------------------------------------
# module
# ---------------------------------------------------------------------------
class FeatureAlignmentPallas:
    """JAX/Pallas port of FeatureAlignment(camera_dim, lidar_dim, output_dim)."""

    def __init__(self, camera_dim: int, lidar_dim: int, output_dim: int, key,
                 compute_dtype=jnp.float32):
        k = jax.random.split(key, 6)
        # Conv2d(cin, cout, 1): weight (Cout, Cin, 1, 1), bias (Cout,)
        self.cam_w = jax.random.normal(k[0], (output_dim, camera_dim, 1, 1),
                                       jnp.float32) * 0.1
        self.cam_b = jax.random.normal(k[1], (output_dim,), jnp.float32) * 0.1
        self.lid_w = jax.random.normal(k[2], (output_dim, lidar_dim, 1, 1),
                                       jnp.float32) * 0.1
        self.lid_b = jax.random.normal(k[3], (output_dim,), jnp.float32) * 0.1
        # BatchNorm2d(output_dim) affine params (shared between both branches).
        self.bn_gamma = 1.0 + 0.1 * jax.random.normal(k[4], (output_dim,), jnp.float32)
        self.bn_beta = 0.1 * jax.random.normal(k[5], (output_dim,), jnp.float32)
        # compute_dtype=jnp.bfloat16 halves the dominant HBM read streams
        # (MXU-native on all gens) at the cost of ~1e-2 tolerance; default f32.
        self.compute_dtype = compute_dtype

    def __call__(self, camera_feat, lidar_feat, *,
                 target_block_bytes=_TARGET_X_BLOCK_BYTES):
        # Note: the 1x1-conv biases (cam_b / lid_b) cancel exactly under
        # training-mode BatchNorm (y - mean(y) removes any per-channel
        # constant), so the compute path does not consume them.
        return _forward(camera_feat, lidar_feat, self.cam_w, self.lid_w,
                        self.bn_gamma, self.bn_beta,
                        compute_dtype=self.compute_dtype,
                        target_block_bytes=target_block_bytes)


# ---------------------------------------------------------------------------
# reference + demo
# ---------------------------------------------------------------------------
def _reference(feat, w, b, gamma, beta):
    c_out = w.shape[0]
    y = jnp.einsum("oc,chw->ohw", w.reshape(c_out, -1), feat) + b[:, None, None]
    mean = jnp.mean(y, axis=(1, 2), keepdims=True)
    var = jnp.mean((y - mean) ** 2, axis=(1, 2), keepdims=True)
    y_hat = (y - mean) / jnp.sqrt(var + _BN_EPS)
    return y_hat * gamma[:, None, None] + beta[:, None, None]


if __name__ == "__main__":
    camera_dim, lidar_dim, output_dim = 4, 6, 8
    H = W = 32   # small demo shape

    key = jax.random.PRNGKey(0)
    k_cam, k_lid, k_params = jax.random.split(key, 3)
    camera_feat = jax.random.normal(k_cam, (camera_dim, H, W), jnp.float32)
    lidar_feat = jax.random.normal(k_lid, (lidar_dim, H, W), jnp.float32)

    module = FeatureAlignmentPallas(camera_dim, lidar_dim, output_dim, k_params)
    aligned_camera, aligned_lidar = module(camera_feat, lidar_feat)
    jax.block_until_ready((aligned_camera, aligned_lidar))

    ref_cam = _reference(camera_feat, module.cam_w, module.cam_b,
                         module.bn_gamma, module.bn_beta)
    ref_lid = _reference(lidar_feat, module.lid_w, module.lid_b,
                         module.bn_gamma, module.bn_beta)
    np.testing.assert_allclose(np.asarray(aligned_camera), np.asarray(ref_cam),
                               rtol=1e-4, atol=1e-4)
    np.testing.assert_allclose(np.asarray(aligned_lidar), np.asarray(ref_lid),
                               rtol=1e-4, atol=1e-4)
    assert aligned_camera.shape == (output_dim, H, W)
    assert aligned_lidar.shape == (output_dim, H, W)

    # Extra check: multi-tile pipelined path with a ragged (masked) last tile
    # and the 2-way parallel stats split (HW = 4000, forced ~512-wide tiles).
    H2, W2 = 50, 80
    cam2 = jax.random.normal(jax.random.PRNGKey(1), (camera_dim, H2, W2), jnp.float32)
    lid2 = jax.random.normal(jax.random.PRNGKey(2), (lidar_dim, H2, W2), jnp.float32)
    out_c2, out_l2 = module(cam2, lid2, target_block_bytes=512 * 4 * camera_dim)
    jax.block_until_ready((out_c2, out_l2))
    np.testing.assert_allclose(
        np.asarray(out_c2),
        np.asarray(_reference(cam2, module.cam_w, module.cam_b,
                              module.bn_gamma, module.bn_beta)),
        rtol=1e-4, atol=1e-4)
    np.testing.assert_allclose(
        np.asarray(out_l2),
        np.asarray(_reference(lid2, module.lid_w, module.lid_b,
                              module.bn_gamma, module.bn_beta)),
        rtol=1e-4, atol=1e-4)

    print("KERNEL_OK")
</pallas_src>

<mosaic_0001>
module attributes {stable_mosaic.version = 11 : i64} {
  func.func @_stats_kernel(%arg0: i32, %arg1: i32, %arg2: memref<4x1024xf32, #tpu.memory_space<vmem>>, %arg3: memref<1x4x1xf32, #tpu.memory_space<vmem>>, %arg4: memref<1x4x4xf32, #tpu.memory_space<vmem>>) attributes {dimension_semantics = [#tpu.dimension_semantics<parallel>, #tpu.dimension_semantics<arbitrary>], iteration_bounds = array<i64: 1, 1>, scalar_prefetch = 0 : i64, scratch_operands = 0 : i64, tpu.core_type = #tpu.core_type<tc>, window_params = [{transform_indices = @transform_0, window_bounds = array<i64: 4, 1024>}, {transform_indices = @transform_1, window_bounds = array<i64: 1, 4, 1>}, {transform_indices = @transform_2, window_bounds = array<i64: 1, 4, 4>}]} {
    %c0_i32 = arith.constant 0 : i32
    %0 = arith.cmpi eq, %arg1, %c0_i32 : i32
    %1 = arith.extui %0 : i1 to i32
    %c0_i32_0 = arith.constant 0 : i32
    %2 = arith.cmpi ne, %1, %c0_i32_0 : i32
    scf.if %2 {
      %cst_15 = arith.constant 0.000000e+00 : f32
      %19 = vector.broadcast %cst_15 : f32 to vector<1x4x1xf32>
      %c0_16 = arith.constant 0 : index
      %c0_17 = arith.constant 0 : index
      %c0_18 = arith.constant 0 : index
      %20 = vector.load %arg3[%c0_16, %c0_17, %c0_18] : memref<1x4x1xf32, #tpu.memory_space<vmem>>, vector<1x4x1xf32>
      tpu.vector_store %arg3[%c0_16, %c0_17, %c0_18], %19 {strides = array<i32>} : memref<1x4x1xf32, #tpu.memory_space<vmem>>, vector<1x4x1xf32>,
      %cst_19 = arith.constant 0.000000e+00 : f32
      %21 = vector.broadcast %cst_19 : f32 to vector<1x4x4xf32>
      %c0_20 = arith.constant 0 : index
      %c0_21 = arith.constant 0 : index
      %c0_22 = arith.constant 0 : index
      %22 = vector.load %arg4[%c0_20, %c0_21, %c0_22] : memref<1x4x4xf32, #tpu.memory_space<vmem>>, vector<1x4x4xf32>
      tpu.vector_store %arg4[%c0_20, %c0_21, %c0_22], %21 {strides = array<i32>} : memref<1x4x4xf32, #tpu.memory_space<vmem>>, vector<1x4x4xf32>,
    } else {
    }
    %c0 = arith.constant 0 : index
    %c0_1 = arith.constant 0 : index
    %3 = vector.load %arg2[%c0, %c0_1] : memref<4x1024xf32, #tpu.memory_space<vmem>>, vector<4x1024xf32>
    %c0_2 = arith.constant 0 : index
    %c0_3 = arith.constant 0 : index
    %c0_4 = arith.constant 0 : index
    %4 = vector.load %arg3[%c0_2, %c0_3, %c0_4] : memref<1x4x1xf32, #tpu.memory_space<vmem>>, vector<1x4x1xf32>
    %5 = vector.shape_cast %4 : vector<1x4x1xf32> to vector<4x1xf32>
    %cst = arith.constant dense<0.000000e+00> : vector<4xf32>
    %6 = vector.multi_reduction <add>, %3, %cst [1] : vector<4x1024xf32> to vector<4xf32>
    %7 = vector.shape_cast %6 : vector<4xf32> to vector<4x1xf32>
    %8 = arith.addf %5, %7 : vector<4x1xf32>
    %c0_5 = arith.constant 0 : index
    %c0_6 = arith.constant 0 : index
    %c0_7 = arith.constant 0 : index
    %9 = vector.load %arg3[%c0_5, %c0_6, %c0_7] : memref<1x4x1xf32, #tpu.memory_space<vmem>>, vector<1x4x1xf32>
    %10 = vector.shape_cast %9 : vector<1x4x1xf32> to vector<4x1xf32>
    %11 = vector.shape_cast %8 : vector<4x1xf32> to vector<1x4x1xf32>
    tpu.vector_store %arg3[%c0_5, %c0_6, %c0_7], %11 {strides = array<i32>} : memref<1x4x1xf32, #tpu.memory_space<vmem>>, vector<1x4x1xf32>,
    %c0_8 = arith.constant 0 : index
    %c0_9 = arith.constant 0 : index
    %c0_10 = arith.constant 0 : index
    %12 = vector.load %arg4[%c0_8, %c0_9, %c0_10] : memref<1x4x4xf32, #tpu.memory_space<vmem>>, vector<1x4x4xf32>
    %13 = vector.shape_cast %12 : vector<1x4x4xf32> to vector<4x4xf32>
    %cst_11 = arith.constant dense<0.000000e+00> : vector<4x4xf32>
    %14 = tpu.matmul %3, %3, %cst_11 {dimension_numbers = #tpu.dot_dimension_numbers<[1], [1], [0], [0], [0, 0, 1, 0], [], []>} : vector<4x1024xf32>, vector<4x1024xf32>, vector<4x4xf32> -> vector<4x4xf32>
    %15 = arith.addf %13, %14 : vector<4x4xf32>
    %c0_12 = arith.constant 0 : index
    %c0_13 = arith.constant 0 : index
    %c0_14 = arith.constant 0 : index
    %16 = vector.load %arg4[%c0_12, %c0_13, %c0_14] : memref<1x4x4xf32, #tpu.memory_space<vmem>>, vector<1x4x4xf32>
    %17 = vector.shape_cast %16 : vector<1x4x4xf32> to vector<4x4xf32>
    %18 = vector.shape_cast %15 : vector<4x4xf32> to vector<1x4x4xf32>
    tpu.vector_store %arg4[%c0_12, %c0_13, %c0_14], %18 {strides = array<i32>} : memref<1x4x4xf32, #tpu.memory_space<vmem>>, vector<1x4x4xf32>,
    return
  }
  func.func @transform_0(%arg0: i32, %arg1: i32) -> (i32, i32) {
    %c1_i32 = arith.constant 1 : i32
    %0 = arith.muli %arg0, %c1_i32 : i32
    %1 = arith.addi %0, %arg1 : i32
    %c0_i32 = arith.constant 0 : i32
    %c0_i32_0 = arith.constant 0 : i32
    return %c0_i32, %1 : i32, i32
  }
  func.func @transform_1(%arg0: i32, %arg1: i32) -> (i32, i32, i32) {
    %c0_i32 = arith.constant 0 : i32
    %c0_i32_0 = arith.constant 0 : i32
    %c0_i32_1 = arith.constant 0 : i32
    return %arg0, %c0_i32, %c0_i32_0 : i32, i32, i32
  }
  func.func @transform_2(%arg0: i32, %arg1: i32) -> (i32, i32, i32) {
    %c0_i32 = arith.constant 0 : i32
    %c0_i32_0 = arith.constant 0 : i32
    %c0_i32_1 = arith.constant 0 : i32
    return %arg0, %c0_i32, %c0_i32_0 : i32, i32, i32
  }
}

module attributes {stable_mosaic.version = 11 : i64} {
  func.func @_align_kernel(%arg0: i32, %arg1: memref<4x1024xf32, #tpu.memory_space<vmem>>, %arg2: memref<8x4xf32, #tpu.memory_space<vmem>>, %arg3: memref<1x4x1xf32, #tpu.memory_space<vmem>>, %arg4: memref<1x4x4xf32, #tpu.memory_space<vmem>>, %arg5: memref<8x1xf32, #tpu.memory_space<vmem>>, %arg6: memref<8x1xf32, #tpu.memory_space<vmem>>, %arg7: memref<8x1024xf32, #tpu.memory_space<vmem>>) attributes {dimension_semantics = [#tpu.dimension_semantics<parallel>], iteration_bounds = array<i64: 1>, scalar_prefetch = 0 : i64, scratch_operands = 0 : i64, tpu.core_type = #tpu.core_type<tc>, window_params = [{transform_indices = @transform_0, window_bounds = array<i64: 4, 1024>}, {pipeline_mode = #tpu.pipeline_mode<synchronous>, transform_indices = @transform_1, window_bounds = array<i64: 8, 4>}, {pipeline_mode = #tpu.pipeline_mode<synchronous>, transform_indices = @transform_2, window_bounds = array<i64: 1, 4, 1>}, {pipeline_mode = #tpu.pipeline_mode<synchronous>, transform_indices = @transform_3, window_bounds = array<i64: 1, 4, 4>}, {pipeline_mode = #tpu.pipeline_mode<synchronous>, transform_indices = @transform_4, window_bounds = array<i64: 8, 1>}, {pipeline_mode = #tpu.pipeline_mode<synchronous>, transform_indices = @transform_5, window_bounds = array<i64: 8, 1>}, {transform_indices = @transform_6, window_bounds = array<i64: 8, 1024>}]} {
    %c0 = arith.constant 0 : index
    %c0_0 = arith.constant 0 : index
    %0 = vector.load %arg2[%c0, %c0_0] : memref<8x4xf32, #tpu.memory_space<vmem>>, vector<8x4xf32>
    %c0_1 = arith.constant 0 : index
    %c0_2 = arith.constant 0 : index
    %c0_3 = arith.constant 0 : index
    %1 = vector.load %arg3[%c0_1, %c0_2, %c0_3] : memref<1x4x1xf32, #tpu.memory_space<vmem>>, vector<1x4x1xf32>
    %cst = arith.constant dense<0.000000e+00> : vector<4x1xf32>
    %2 = vector.multi_reduction <add>, %1, %cst [0] : vector<1x4x1xf32> to vector<4x1xf32>
    %c0_4 = arith.constant 0 : index
    %c0_5 = arith.constant 0 : index
    %c0_6 = arith.constant 0 : index
    %3 = vector.load %arg4[%c0_4, %c0_5, %c0_6] : memref<1x4x4xf32, #tpu.memory_space<vmem>>, vector<1x4x4xf32>
    %cst_7 = arith.constant dense<0.000000e+00> : vector<4x4xf32>
    %4 = vector.multi_reduction <add>, %3, %cst_7 [0] : vector<1x4x4xf32> to vector<4x4xf32>
    %cst_8 = arith.constant dense<0.000000e+00> : vector<8x1xf32>
    %5 = tpu.matmul %0, %2, %cst_8 {dimension_numbers = #tpu.dot_dimension_numbers<[1], [0], [0], [1], [0, 0, 1, 1], [], []>} : vector<8x4xf32>, vector<4x1xf32>, vector<8x1xf32> -> vector<8x1xf32>
    %cst_9 = arith.constant 9.765625E-4 : f32
    %6 = vector.broadcast %cst_9 : f32 to vector<8x1xf32>
    %7 = arith.mulf %5, %6 : vector<8x1xf32>
    %cst_10 = arith.constant dense<0.000000e+00> : vector<8x4xf32>
    %8 = tpu.matmul %0, %4, %cst_10 {dimension_numbers = #tpu.dot_dimension_numbers<[1], [0], [0], [1], [0, 0, 1, 1], [], []>} : vector<8x4xf32>, vector<4x4xf32>, vector<8x4xf32> -> vector<8x4xf32>
    %9 = arith.mulf %8, %0 : vector<8x4xf32>
    %cst_11 = arith.constant dense<0.000000e+00> : vector<8xf32>
    %10 = vector.multi_reduction <add>, %9, %cst_11 [1] : vector<8x4xf32> to vector<8xf32>
    %11 = vector.shape_cast %10 : vector<8xf32> to vector<8x1xf32>
    %cst_12 = arith.constant 9.765625E-4 : f32
    %12 = vector.broadcast %cst_12 : f32 to vector<8x1xf32>
    %13 = arith.mulf %11, %12 : vector<8x1xf32>
    %14 = arith.mulf %7, %7 : vector<8x1xf32>
    %15 = arith.subf %13, %14 : vector<8x1xf32>
    %cst_13 = arith.constant 0.000000e+00 : f32
    %16 = vector.broadcast %cst_13 : f32 to vector<8x1xf32>
    %17 = arith.maximumf %15, %16 : vector<8x1xf32>
    %c0_14 = arith.constant 0 : index
    %c0_15 = arith.constant 0 : index
    %18 = vector.load %arg5[%c0_14, %c0_15] : memref<8x1xf32, #tpu.memory_space<vmem>>, vector<8x1xf32>
    %cst_16 = arith.constant 9.99999974E-6 : f32
    %19 = vector.broadcast %cst_16 : f32 to vector<8x1xf32>
    %20 = arith.addf %17, %19 : vector<8x1xf32>
    %21 = math.rsqrt %20 : vector<8x1xf32>
    %22 = arith.mulf %18, %21 : vector<8x1xf32>
    %c0_17 = arith.constant 0 : index
    %c0_18 = arith.constant 0 : index
    %23 = vector.load %arg6[%c0_17, %c0_18] : memref<8x1xf32, #tpu.memory_space<vmem>>, vector<8x1xf32>
    %24 = arith.mulf %22, %7 : vector<8x1xf32>
    %25 = arith.subf %23, %24 : vector<8x1xf32>
    %c0_19 = arith.constant 0 : index
    %c0_20 = arith.constant 0 : index
    %26 = vector.load %arg2[%c0_19, %c0_20] : memref<8x4xf32, #tpu.memory_space<vmem>>, vector<8x4xf32>
    %c0_21 = arith.constant 0 : index
    %c0_22 = arith.constant 0 : index
    %27 = vector.load %arg1[%c0_21, %c0_22] : memref<4x1024xf32, #tpu.memory_space<vmem>>, vector<4x1024xf32>
    %cst_23 = arith.constant dense<0.000000e+00> : vector<8x1024xf32>
    %28 = tpu.matmul %26, %27, %cst_23 {dimension_numbers = #tpu.dot_dimension_numbers<[1], [0], [0], [1], [0, 0, 1, 1], [], []>} : vector<8x4xf32>, vector<4x1024xf32>, vector<8x1024xf32> -> vector<8x1024xf32>
    %29 = vector.broadcast %22 : vector<8x1xf32> to vector<8x1024xf32>
    %30 = arith.mulf %28, %29 : vector<8x1024xf32>
    %31 = vector.broadcast %25 : vector<8x1xf32> to vector<8x1024xf32>
    %32 = arith.addf %30, %31 : vector<8x1024xf32>
    %c0_24 = arith.constant 0 : index
    %c0_25 = arith.constant 0 : index
    %33 = vector.load %arg7[%c0_24, %c0_25] : memref<8x1024xf32, #tpu.memory_space<vmem>>, vector<8x1024xf32>
    tpu.vector_store %arg7[%c0_24, %c0_25], %32 {strides = array<i32>} : memref<8x1024xf32, #tpu.memory_space<vmem>>, vector<8x1024xf32>,
    return
  }
  func.func @transform_0(%arg0: i32) -> (i32, i32) {
    %c0_i32 = arith.constant 0 : i32
    %c0_i32_0 = arith.constant 0 : i32
    return %c0_i32, %arg0 : i32, i32
  }
  func.func @transform_1(%arg0: i32) -> (i32, i32) {
    %c0_i32 = arith.constant 0 : i32
    %c0_i32_0 = arith.constant 0 : i32
    %c0_i32_1 = arith.constant 0 : i32
    return %c0_i32, %c0_i32_0 : i32, i32
  }
  func.func @transform_2(%arg0: i32) -> (i32, i32, i32) {
    %c0_i32 = arith.constant 0 : i32
    %c0_i32_0 = arith.constant 0 : i32
    %c0_i32_1 = arith.constant 0 : i32
    %c0_i32_2 = arith.constant 0 : i32
    return %c0_i32, %c0_i32_0, %c0_i32_1 : i32, i32, i32
  }
  func.func @transform_3(%arg0: i32) -> (i32, i32, i32) {
    %c0_i32 = arith.constant 0 : i32
    %c0_i32_0 = arith.constant 0 : i32
    %c0_i32_1 = arith.constant 0 : i32
    %c0_i32_2 = arith.constant 0 : i32
    return %c0_i32, %c0_i32_0, %c0_i32_1 : i32, i32, i32
  }
  func.func @transform_4(%arg0: i32) -> (i32, i32) {
    %c0_i32 = arith.constant 0 : i32
    %c0_i32_0 = arith.constant 0 : i32
    %c0_i32_1 = arith.constant 0 : i32
    return %c0_i32, %c0_i32_0 : i32, i32
  }
  func.func @transform_5(%arg0: i32) -> (i32, i32) {
    %c0_i32 = arith.constant 0 : i32
    %c0_i32_0 = arith.constant 0 : i32
    %c0_i32_1 = arith.constant 0 : i32
    return %c0_i32, %c0_i32_0 : i32, i32
  }
  func.func @transform_6(%arg0: i32) -> (i32, i32) {
    %c0_i32 = arith.constant 0 : i32
    %c0_i32_0 = arith.constant 0 : i32
    return %c0_i32, %arg0 : i32, i32
  }
}

module attributes {stable_mosaic.version = 11 : i64} {
  func.func @_stats_kernel(%arg0: i32, %arg1: i32, %arg2: memref<6x1024xf32, #tpu.memory_space<vmem>>, %arg3: memref<1x6x1xf32, #tpu.memory_space<vmem>>, %arg4: memref<1x6x6xf32, #tpu.memory_space<vmem>>) attributes {dimension_semantics = [#tpu.dimension_semantics<parallel>, #tpu.dimension_semantics<arbitrary>], iteration_bounds = array<i64: 1, 1>, scalar_prefetch = 0 : i64, scratch_operands = 0 : i64, tpu.core_type = #tpu.core_type<tc>, window_params = [{transform_indices = @transform_0, window_bounds = array<i64: 6, 1024>}, {transform_indices = @transform_1, window_bounds = array<i64: 1, 6, 1>}, {transform_indices = @transform_2, window_bounds = array<i64: 1, 6, 6>}]} {
    %c0_i32 = arith.constant 0 : i32
    %0 = arith.cmpi eq, %arg1, %c0_i32 : i32
    %1 = arith.extui %0 : i1 to i32
    %c0_i32_0 = arith.constant 0 : i32
    %2 = arith.cmpi ne, %1, %c0_i32_0 : i32
    scf.if %2 {
      %cst_15 = arith.constant 0.000000e+00 : f32
      %19 = vector.broadcast %cst_15 : f32 to vector<1x6x1xf32>
      %c0_16 = arith.constant 0 : index
      %c0_17 = arith.constant 0 : index
      %c0_18 = arith.constant 0 : index
      %20 = vector.load %arg3[%c0_16, %c0_17, %c0_18] : memref<1x6x1xf32, #tpu.memory_space<vmem>>, vector<1x6x1xf32>
      tpu.vector_store %arg3[%c0_16, %c0_17, %c0_18], %19 {strides = array<i32>} : memref<1x6x1xf32, #tpu.memory_space<vmem>>, vector<1x6x1xf32>,
      %cst_19 = arith.constant 0.000000e+00 : f32
      %21 = vector.broadcast %cst_19 : f32 to vector<1x6x6xf32>
      %c0_20 = arith.constant 0 : index
      %c0_21 = arith.constant 0 : index
      %c0_22 = arith.constant 0 : index
      %22 = vector.load %arg4[%c0_20, %c0_21, %c0_22] : memref<1x6x6xf32, #tpu.memory_space<vmem>>, vector<1x6x6xf32>
      tpu.vector_store %arg4[%c0_20, %c0_21, %c0_22], %21 {strides = array<i32>} : memref<1x6x6xf32, #tpu.memory_space<vmem>>, vector<1x6x6xf32>,
    } else {
    }
    %c0 = arith.constant 0 : index
    %c0_1 = arith.constant 0 : index
    %3 = vector.load %arg2[%c0, %c0_1] : memref<6x1024xf32, #tpu.memory_space<vmem>>, vector<6x1024xf32>
    %c0_2 = arith.constant 0 : index
    %c0_3 = arith.constant 0 : index
    %c0_4 = arith.constant 0 : index
    %4 = vector.load %arg3[%c0_2, %c0_3, %c0_4] : memref<1x6x1xf32, #tpu.memory_space<vmem>>, vector<1x6x1xf32>
    %5 = vector.shape_cast %4 : vector<1x6x1xf32> to vector<6x1xf32>
    %cst = arith.constant dense<0.000000e+00> : vector<6xf32>
    %6 = vector.multi_reduction <add>, %3, %cst [1] : vector<6x1024xf32> to vector<6xf32>
    %7 = vector.shape_cast %6 : vector<6xf32> to vector<6x1xf32>
    %8 = arith.addf %5, %7 : vector<6x1xf32>
    %c0_5 = arith.constant 0 : index
    %c0_6 = arith.constant 0 : index
    %c0_7 = arith.constant 0 : index
    %9 = vector.load %arg3[%c0_5, %c0_6, %c0_7] : memref<1x6x1xf32, #tpu.memory_space<vmem>>, vector<1x6x1xf32>
    %10 = vector.shape_cast %9 : vector<1x6x1xf32> to vector<6x1xf32>
    %11 = vector.shape_cast %8 : vector<6x1xf32> to vector<1x6x1xf32>
    tpu.vector_store %arg3[%c0_5, %c0_6, %c0_7], %11 {strides = array<i32>} : memref<1x6x1xf32, #tpu.memory_space<vmem>>, vector<1x6x1xf32>,
    %c0_8 = arith.constant 0 : index
    %c0_9 = arith.constant 0 : index
    %c0_10 = arith.constant 0 : index
    %12 = vector.load %arg4[%c0_8, %c0_9, %c0_10] : memref<1x6x6xf32, #tpu.memory_space<vmem>>, vector<1x6x6xf32>
    %13 = vector.shape_cast %12 : vector<1x6x6xf32> to vector<6x6xf32>
    %cst_11 = arith.constant dense<0.000000e+00> : vector<6x6xf32>
    %14 = tpu.matmul %3, %3, %cst_11 {dimension_numbers = #tpu.dot_dimension_numbers<[1], [1], [0], [0], [0, 0, 1, 0], [], []>} : vector<6x1024xf32>, vector<6x1024xf32>, vector<6x6xf32> -> vector<6x6xf32>
    %15 = arith.addf %13, %14 : vector<6x6xf32>
    %c0_12 = arith.constant 0 : index
    %c0_13 = arith.constant 0 : index
    %c0_14 = arith.constant 0 : index
    %16 = vector.load %arg4[%c0_12, %c0_13, %c0_14] : memref<1x6x6xf32, #tpu.memory_space<vmem>>, vector<1x6x6xf32>
    %17 = vector.shape_cast %16 : vector<1x6x6xf32> to vector<6x6xf32>
    %18 = vector.shape_cast %15 : vector<6x6xf32> to vector<1x6x6xf32>
    tpu.vector_store %arg4[%c0_12, %c0_13, %c0_14], %18 {strides = array<i32>} : memref<1x6x6xf32, #tpu.memory_space<vmem>>, vector<1x6x6xf32>,
    return
  }
  func.func @transform_0(%arg0: i32, %arg1: i32) -> (i32, i32) {
    %c1_i32 = arith.constant 1 : i32
    %0 = arith.muli %arg0, %c1_i32 : i32
    %1 = arith.addi %0, %arg1 : i32
    %c0_i32 = arith.constant 0 : i32
    %c0_i32_0 = arith.constant 0 : i32
    return %c0_i32, %1 : i32, i32
  }
  func.func @transform_1(%arg0: i32, %arg1: i32) -> (i32, i32, i32) {
    %c0_i32 = arith.constant 0 : i32
    %c0_i32_0 = arith.constant 0 : i32
    %c0_i32_1 = arith.constant 0 : i32
    return %arg0, %c0_i32, %c0_i32_0 : i32, i32, i32
  }
  func.func @transform_2(%arg0: i32, %arg1: i32) -> (i32, i32, i32) {
    %c0_i32 = arith.constant 0 : i32
    %c0_i32_0 = arith.constant 0 : i32
    %c0_i32_1 = arith.constant 0 : i32
    return %arg0, %c0_i32, %c0_i32_0 : i32, i32, i32
  }
}

module attributes {stable_mosaic.version = 11 : i64} {
  func.func @_align_kernel(%arg0: i32, %arg1: memref<6x1024xf32, #tpu.memory_space<vmem>>, %arg2: memref<8x6xf32, #tpu.memory_space<vmem>>, %arg3: memref<1x6x1xf32, #tpu.memory_space<vmem>>, %arg4: memref<1x6x6xf32, #tpu.memory_space<vmem>>, %arg5: memref<8x1xf32, #tpu.memory_space<vmem>>, %arg6: memref<8x1xf32, #tpu.memory_space<vmem>>, %arg7: memref<8x1024xf32, #tpu.memory_space<vmem>>) attributes {dimension_semantics = [#tpu.dimension_semantics<parallel>], iteration_bounds = array<i64: 1>, scalar_prefetch = 0 : i64, scratch_operands = 0 : i64, tpu.core_type = #tpu.core_type<tc>, window_params = [{transform_indices = @transform_0, window_bounds = array<i64: 6, 1024>}, {pipeline_mode = #tpu.pipeline_mode<synchronous>, transform_indices = @transform_1, window_bounds = array<i64: 8, 6>}, {pipeline_mode = #tpu.pipeline_mode<synchronous>, transform_indices = @transform_2, window_bounds = array<i64: 1, 6, 1>}, {pipeline_mode = #tpu.pipeline_mode<synchronous>, transform_indices = @transform_3, window_bounds = array<i64: 1, 6, 6>}, {pipeline_mode = #tpu.pipeline_mode<synchronous>, transform_indices = @transform_4, window_bounds = array<i64: 8, 1>}, {pipeline_mode = #tpu.pipeline_mode<synchronous>, transform_indices = @transform_5, window_bounds = array<i64: 8, 1>}, {transform_indices = @transform_6, window_bounds = array<i64: 8, 1024>}]} {
    %c0 = arith.constant 0 : index
    %c0_0 = arith.constant 0 : index
    %0 = vector.load %arg2[%c0, %c0_0] : memref<8x6xf32, #tpu.memory_space<vmem>>, vector<8x6xf32>
    %c0_1 = arith.constant 0 : index
    %c0_2 = arith.constant 0 : index
    %c0_3 = arith.constant 0 : index
    %1 = vector.load %arg3[%c0_1, %c0_2, %c0_3] : memref<1x6x1xf32, #tpu.memory_space<vmem>>, vector<1x6x1xf32>
    %cst = arith.constant dense<0.000000e+00> : vector<6x1xf32>
    %2 = vector.multi_reduction <add>, %1, %cst [0] : vector<1x6x1xf32> to vector<6x1xf32>
    %c0_4 = arith.constant 0 : index
    %c0_5 = arith.constant 0 : index
    %c0_6 = arith.constant 0 : index
    %3 = vector.load %arg4[%c0_4, %c0_5, %c0_6] : memref<1x6x6xf32, #tpu.memory_space<vmem>>, vector<1x6x6xf32>
    %cst_7 = arith.constant dense<0.000000e+00> : vector<6x6xf32>
    %4 = vector.multi_reduction <add>, %3, %cst_7 [0] : vector<1x6x6xf32> to vector<6x6xf32>
    %cst_8 = arith.constant dense<0.000000e+00> : vector<8x1xf32>
    %5 = tpu.matmul %0, %2, %cst_8 {dimension_numbers = #tpu.dot_dimension_numbers<[1], [0], [0], [1], [0, 0, 1, 1], [], []>} : vector<8x6xf32>, vector<6x1xf32>, vector<8x1xf32> -> vector<8x1xf32>
    %cst_9 = arith.constant 9.765625E-4 : f32
    %6 = vector.broadcast %cst_9 : f32 to vector<8x1xf32>
    %7 = arith.mulf %5, %6 : vector<8x1xf32>
    %cst_10 = arith.constant dense<0.000000e+00> : vector<8x6xf32>
    %8 = tpu.matmul %0, %4, %cst_10 {dimension_numbers = #tpu.dot_dimension_numbers<[1], [0], [0], [1], [0, 0, 1, 1], [], []>} : vector<8x6xf32>, vector<6x6xf32>, vector<8x6xf32> -> vector<8x6xf32>
    %9 = arith.mulf %8, %0 : vector<8x6xf32>
    %cst_11 = arith.constant dense<0.000000e+00> : vector<8xf32>
    %10 = vector.multi_reduction <add>, %9, %cst_11 [1] : vector<8x6xf32> to vector<8xf32>
    %11 = vector.shape_cast %10 : vector<8xf32> to vector<8x1xf32>
    %cst_12 = arith.constant 9.765625E-4 : f32
    %12 = vector.broadcast %cst_12 : f32 to vector<8x1xf32>
    %13 = arith.mulf %11, %12 : vector<8x1xf32>
    %14 = arith.mulf %7, %7 : vector<8x1xf32>
    %15 = arith.subf %13, %14 : vector<8x1xf32>
    %cst_13 = arith.constant 0.000000e+00 : f32
    %16 = vector.broadcast %cst_13 : f32 to vector<8x1xf32>
    %17 = arith.maximumf %15, %16 : vector<8x1xf32>
    %c0_14 = arith.constant 0 : index
    %c0_15 = arith.constant 0 : index
    %18 = vector.load %arg5[%c0_14, %c0_15] : memref<8x1xf32, #tpu.memory_space<vmem>>, vector<8x1xf32>
    %cst_16 = arith.constant 9.99999974E-6 : f32
    %19 = vector.broadcast %cst_16 : f32 to vector<8x1xf32>
    %20 = arith.addf %17, %19 : vector<8x1xf32>
    %21 = math.rsqrt %20 : vector<8x1xf32>
    %22 = arith.mulf %18, %21 : vector<8x1xf32>
    %c0_17 = arith.constant 0 : index
    %c0_18 = arith.constant 0 : index
    %23 = vector.load %arg6[%c0_17, %c0_18] : memref<8x1xf32, #tpu.memory_space<vmem>>, vector<8x1xf32>
    %24 = arith.mulf %22, %7 : vector<8x1xf32>
    %25 = arith.subf %23, %24 : vector<8x1xf32>
    %c0_19 = arith.constant 0 : index
    %c0_20 = arith.constant 0 : index
    %26 = vector.load %arg2[%c0_19, %c0_20] : memref<8x6xf32, #tpu.memory_space<vmem>>, vector<8x6xf32>
    %c0_21 = arith.constant 0 : index
    %c0_22 = arith.constant 0 : index
    %27 = vector.load %arg1[%c0_21, %c0_22] : memref<6x1024xf32, #tpu.memory_space<vmem>>, vector<6x1024xf32>
    %cst_23 = arith.constant dense<0.000000e+00> : vector<8x1024xf32>
    %28 = tpu.matmul %26, %27, %cst_23 {dimension_numbers = #tpu.dot_dimension_numbers<[1], [0], [0], [1], [0, 0, 1, 1], [], []>} : vector<8x6xf32>, vector<6x1024xf32>, vector<8x1024xf32> -> vector<8x1024xf32>
    %29 = vector.broadcast %22 : vector<8x1xf32> to vector<8x1024xf32>
    %30 = arith.mulf %28, %29 : vector<8x1024xf32>
    %31 = vector.broadcast %25 : vector<8x1xf32> to vector<8x1024xf32>
    %32 = arith.addf %30, %31 : vector<8x1024xf32>
    %c0_24 = arith.constant 0 : index
    %c0_25 = arith.constant 0 : index
    %33 = vector.load %arg7[%c0_24, %c0_25] : memref<8x1024xf32, #tpu.memory_space<vmem>>, vector<8x1024xf32>
    tpu.vector_store %arg7[%c0_24, %c0_25], %32 {strides = array<i32>} : memref<8x1024xf32, #tpu.memory_space<vmem>>, vector<8x1024xf32>,
    return
  }
  func.func @transform_0(%arg0: i32) -> (i32, i32) {
    %c0_i32 = arith.constant 0 : i32
    %c0_i32_0 = arith.constant 0 : i32
    return %c0_i32, %arg0 : i32, i32
  }
  func.func @transform_1(%arg0: i32) -> (i32, i32) {
    %c0_i32 = arith.constant 0 : i32
    %c0_i32_0 = arith.constant 0 : i32
    %c0_i32_1 = arith.constant 0 : i32
    return %c0_i32, %c0_i32_0 : i32, i32
  }
  func.func @transform_2(%arg0: i32) -> (i32, i32, i32) {
    %c0_i32 = arith.constant 0 : i32
    %c0_i32_0 = arith.constant 0 : i32
    %c0_i32_1 = arith.constant 0 : i32
    %c0_i32_2 = arith.constant 0 : i32
    return %c0_i32, %c0_i32_0, %c0_i32_1 : i32, i32, i32
  }
  func.func @transform_3(%arg0: i32) -> (i32, i32, i32) {
    %c0_i32 = arith.constant 0 : i32
    %c0_i32_0 = arith.constant 0 : i32
    %c0_i32_1 = arith.constant 0 : i32
    %c0_i32_2 = arith.constant 0 : i32
    return %c0_i32, %c0_i32_0, %c0_i32_1 : i32, i32, i32
  }
  func.func @transform_4(%arg0: i32) -> (i32, i32) {
    %c0_i32 = arith.constant 0 : i32
    %c0_i32_0 = arith.constant 0 : i32
    %c0_i32_1 = arith.constant 0 : i32
    return %c0_i32, %c0_i32_0 : i32, i32
  }
  func.func @transform_5(%arg0: i32) -> (i32, i32) {
    %c0_i32 = arith.constant 0 : i32
    %c0_i32_0 = arith.constant 0 : i32
    %c0_i32_1 = arith.constant 0 : i32
    return %c0_i32, %c0_i32_0 : i32, i32
  }
  func.func @transform_6(%arg0: i32) -> (i32, i32) {
    %c0_i32 = arith.constant 0 : i32
    %c0_i32_0 = arith.constant 0 : i32
    return %c0_i32, %arg0 : i32, i32
  }
}

</mosaic_0001>

<bundles_post_ra>
// kernel: _forward.6
= control target key start
LH: loop header
LB: loop body
LE: loop exit
PB: predicated region body
PF: predicated region fallthrough
CT: control target
= control target key end

     0   :  { %vm49_vm0 = vcmask 1045504   ;;  %vm38_vm1 = vcmask 46080   ;;  %vm36_vm2 = vcmask 5120   ;;  %v369_v23 = vmov 0.0   ;;  %s437_s0 = inlined_call_operand.vmem [shape: f32[6,1024], index: 0, kind: input, shape index: {}]   ;;  %s438_s2 = inlined_call_operand.vmem [shape: f32[1,6,6], index: 2, kind: output, shape index: {1}]   ;;  %s439_s1 = inlined_call_operand.vmem [shape: f32[1,6,1], index: 1, kind: output, shape index: {0}]  }
   0x1   :  { %v41_v0 = vld [vmem:[%s437_s0 + $0x8] sm:$0x3f]  ;;  %v40_v1 = vld [vmem:[%s437_s0] sm:$0x3f]  ;;  %v43_v2 = vld [vmem:[%s437_s0 + $0x18] sm:$0x3f] }
   0x2   :  { %v51_v3 = vsel %vm49_vm0, %v41_v0, 0.0  ;;  %71 = vmatprep.subr.mxu0 %v41_v0  ;;  %v50_v4 = vsel %vm49_vm0, %v40_v1, 0.0  ;;  %141 = vmatprep.subr.mxu1 %v43_v2  ;;  %v42_v5 = vld [vmem:[%s437_s0 + $0x10] sm:$0x3f]  ;;  %v45_v8 = vld [vmem:[%s437_s0 + $0x28] sm:$0x3f] }
   0x3   :  { %v52_v6 = vadd.f32 %v51_v3, %v50_v4  ;;  %72 = vmatpush1.xpose.msra.mxu0 %v40_v1  ;;  %v53_v7 = vsel %vm49_vm0, %v42_v5, 0.0  ;;  %142 = vmatpush1.xpose.msra.mxu1 %v42_v5  ;;  %v55_v9 = vsel %vm49_vm0, %v43_v2, 0.0  ;;  %v44_v10 = vld [vmem:[%s437_s0 + $0x20] sm:$0x3f]  ;;  %v47_v11 = vld [vmem:[%s437_s0 + $0x38] sm:$0x3f] }
   0x4   :  { %135 = vmatprep.mubr.f32.mxu0 %v41_v0  ;;  %205 = vmatprep.mubr.f32.mxu1 %v43_v2  ;;  %v46_v13 = vld [vmem:[%s437_s0 + $0x30] sm:$0x3f]  ;;  %v57_v14 = vsel %vm49_vm0, %v44_v10, 0.0  ;;  %v59_v16 = vsel %vm49_vm0, %v45_v8, 0.0  ;;  %v63_v20 = vsel %vm49_vm0, %v47_v11, 0.0 }
   0x5   :  { %v54_v12 = vadd.f32 %v53_v7, %v52_v6  ;;  %211 = vmatprep.subr.mxu0 %v45_v8  ;;  %281 = vmatprep.subr.mxu1 %v47_v11  ;;  %v61_v18 = vsel %vm49_vm0, %v46_v13, 0.0  ;;  %39 = vst.msk [vmem:[%s438_s2] sm:$0x3f] %vm38_vm1, %v369_v23 }
   0x6   :  { %136 = vmatmul.mubr.f32.vlgmr.msra.gmra.mrb[0].mxu0 %v40_v1  ;;  %206 = vmatmul.mubr.f32.vlgmr.msra.gmra.mrb[0].mxu1 %v42_v5  ;;  %37 = vst.msk [vmem:[%s439_s1] sm:$0x3f] %vm36_vm2, %v369_v23 }
   0x7   :  { %v56_v15 = vadd.f32 %v55_v9, %v54_v12  ;;  %212 = vmatpush1.xpose.msra.mxu0 %v44_v10  ;;  %275 = vmatprep.mubr.f32.mxu0 %v45_v8 }
   0x8   :  { %282 = vmatpush1.xpose.msra.mxu1 %v46_v13  ;;  %345 = vmatprep.mubr.f32.mxu1 %v47_v11 }
   0x9   :  { %v58_v17 = vadd.f32 %v57_v14, %v56_v15 }
   0xa   :  { %276 = vmatmul.mubr.f32.vlgmr.msra.gmra.mrb[2].mxu0 %v44_v10 }
   0xb   :  { %346 = vmatmul.mubr.f32.vlgmr.msra.gmra.mrb[2].mxu1 %v46_v13  ;;  %v60_v19 = vadd.f32 %v59_v16, %v58_v17 }
   0xc   :  { %v70_v36 = vld [vmem:[%s438_s2] sm:$0x3f] }
   0xd   :  { %v62_v21 = vadd.f32 %v61_v18, %v60_v19  ;;  %v48_v24 = vld [vmem:[%s439_s1] sm:$0x3f] }
   0xf   :  { %v64_v22 = vadd.f32 %v63_v20, %v62_v21 }
  0x11   :  { %65 = vadd.xlane.f32.xlu0 %v64_v22 }
  0x9e   :  { %v66_v25 = vpop.xlane.xlu0 %65 }
  0x9f   :  { %v67_v26 = vadd.f32 %v66_v25, %v48_v24 }
  0xa1   :  { %69 = vst.msk [vmem:[%s439_s1] sm:$0x3f] %vm36_vm2, %v67_v26 }
  0xd9   :  { %v137_v27 = vpop.f32.mrb[0].mxu0  ;;  %v207_v28 = vpop.f32.mrb[0].mxu1 }
  0xda   :  { %v139_v29 = vpop.f32.mrb[1].mxu0  ;;  %v208_v30 = vadd.f32 %v207_v28, %v137_v27  ;;  %v209_v31 = vpop.f32.mrb[1].mxu1 }
  0xdd   :  { %v277_v32 = vpop.f32.mrb[2].mxu0 }
  0xde   :  { %v278_v33 = vadd.f32 %v277_v32, %v208_v30  ;;  %v279_v34 = vpop.f32.mrb[3].mxu0  ;;  %v347_v35 = vpop.f32.mrb[2].mxu1 }
  0xdf   :  { %v349_v37 = vpop.f32.mrb[3].mxu1 }
  0xe0   :  { %v348_v38 = vadd.f32 %v347_v35, %v278_v33 }
  0xe2   :  { %v351_v39 = vadd.f32 %v348_v38, %v70_v36 }
  0xe4   :  { %353 = vst.msk [vmem:[%s438_s2] sm:$0x3f] %vm38_vm1, %v351_v39 }

// kernel: _forward.4
= control target key start
LH: loop header
LB: loop body
LE: loop exit
PB: predicated region body
PF: predicated region fallthrough
CT: control target
= control target key end

     0   :  { %vm57_vm0 = vcmask 1043456   ;;  %vm38_vm1 = vcmask 27648   ;;  %vm36_vm2 = vcmask 3072   ;;  %v381_v23 = vmov 0.0   ;;  %s437_s0 = inlined_call_operand.vmem [shape: f32[4,1024], index: 0, kind: input, shape index: {}]   ;;  %s438_s2 = inlined_call_operand.vmem [shape: f32[1,4,4], index: 2, kind: output, shape index: {1}]   ;;  %s439_s1 = inlined_call_operand.vmem [shape: f32[1,4,1], index: 1, kind: output, shape index: {0}]  }
   0x1   :  { %v40_v0 = vld [vmem:[%s437_s0] sm:$0xff]  ;;  %v41_v1 = vld [vmem:[%s437_s0 + $0x8] sm:$0xff]  ;;  %v42_v2 = vld [vmem:[%s437_s0 + $0x10] sm:$0xff]  ;;  %39 = vst.msk [vmem:[%s438_s2] sm:$0xf] %vm38_vm1, %v381_v23 }
   0x2   :  { %v49_v3 = vcombine.high %v40_v0, %v40_v0  ;;  %v58_v4 = vsel %vm57_vm0, %v40_v0, 0.0  ;;  %v50_v5 = vcombine.high %v41_v1, %v41_v1  ;;  %v43_v6 = vld [vmem:[%s437_s0 + $0x18] sm:$0xff]  ;;  %v51_v7 = vcombine.high %v42_v2, %v42_v2  ;;  %37 = vst.msk [vmem:[%s439_s1] sm:$0xf] %vm36_vm2, %v381_v23 }
   0x3   :  { %v52_v8 = vcombine.high %v43_v6, %v43_v6  ;;  %v61_v10 = vsel %vm57_vm0, %v41_v1, 0.0  ;;  %v65_v14 = vsel %vm57_vm0, %v42_v2, 0.0  ;;  %v69_v18 = vsel %vm57_vm0, %v43_v6, 0.0 }
   0x4   :  { %v59_v9 = vsel %vm57_vm0, %v49_v3, 0.0  ;;  %79 = vmatprep.subr.mxu0 %v49_v3  ;;  %149 = vmatprep.subr.mxu1 %v50_v5  ;;  %v63_v12 = vsel %vm57_vm0, %v50_v5, 0.0  ;;  %v67_v16 = vsel %vm57_vm0, %v51_v7, 0.0 }
   0x5   :  { %v60_v11 = vadd.f32 %v59_v9, %v58_v4  ;;  %80 = vmatpush1.xpose.msra.mxu0 %v40_v0  ;;  %150 = vmatpush1.xpose.msra.mxu1 %v41_v1  ;;  %v71_v20 = vsel %vm57_vm0, %v52_v8, 0.0 }
   0x6   :  { %143 = vmatprep.mubr.f32.mxu0 %v49_v3  ;;  %213 = vmatprep.mubr.f32.mxu1 %v50_v5 }
   0x7   :  { %219 = vmatprep.subr.mxu0 %v51_v7  ;;  %289 = vmatprep.subr.mxu1 %v52_v8  ;;  %v62_v13 = vadd.f32 %v61_v10, %v60_v11 }
   0x8   :  { %144 = vmatmul.mubr.f32.vlgmr.msra.gmra.mrb[0].mxu0 %v40_v0  ;;  %214 = vmatmul.mubr.f32.vlgmr.msra.gmra.mrb[0].mxu1 %v41_v1  ;;  %v78_v36 = vld [vmem:[%s438_s2] sm:$0xf] }
   0x9   :  { %220 = vmatpush1.xpose.msra.mxu0 %v42_v2  ;;  %283 = vmatprep.mubr.f32.mxu0 %v51_v7  ;;  %v64_v15 = vadd.f32 %v63_v12, %v62_v13  ;;  %v44_v24 = vld [vmem:[%s439_s1] sm:$0xf] }
   0xa   :  { %290 = vmatpush1.xpose.msra.mxu1 %v43_v6  ;;  %353 = vmatprep.mubr.f32.mxu1 %v52_v8 }
   0xb   :  { %v66_v17 = vadd.f32 %v65_v14, %v64_v15 }
   0xc   :  { %284 = vmatmul.mubr.f32.vlgmr.msra.gmra.mrb[2].mxu0 %v42_v2 }
   0xd   :  { %354 = vmatmul.mubr.f32.vlgmr.msra.gmra.mrb[2].mxu1 %v43_v6  ;;  %v68_v19 = vadd.f32 %v67_v16, %v66_v17 }
   0xf   :  { %v70_v21 = vadd.f32 %v69_v18, %v68_v19 }
  0x11   :  { %v72_v22 = vadd.f32 %v71_v20, %v70_v21 }
  0x13   :  { %73 = vadd.xlane.f32.xlu0 %v72_v22 }
  0xa0   :  { %v74_v25 = vpop.xlane.xlu0 %73 }
  0xa1   :  { %v75_v26 = vadd.f32 %v74_v25, %v44_v24 }
  0xa3   :  { %77 = vst.msk [vmem:[%s439_s1] sm:$0xf] %vm36_vm2, %v75_v26 }
  0xdb   :  { %v145_v27 = vpop.f32.mrb[0].mxu0  ;;  %v215_v28 = vpop.f32.mrb[0].mxu1 }
  0xdc   :  { %v147_v29 = vpop.f32.mrb[1].mxu0  ;;  %v216_v30 = vadd.f32 %v215_v28, %v145_v27  ;;  %v217_v31 = vpop.f32.mrb[1].mxu1 }
  0xdf   :  { %v285_v32 = vpop.f32.mrb[2].mxu0 }
  0xe0   :  { %v286_v33 = vadd.f32 %v285_v32, %v216_v30  ;;  %v287_v34 = vpop.f32.mrb[3].mxu0  ;;  %v355_v35 = vpop.f32.mrb[2].mxu1 }
  0xe1   :  { %v357_v37 = vpop.f32.mrb[3].mxu1 }
  0xe2   :  { %v356_v38 = vadd.f32 %v355_v35, %v286_v33 }
  0xe4   :  { %v359_v39 = vadd.f32 %v356_v38, %v78_v36 }
  0xe6   :  { %361 = vst.msk [vmem:[%s438_s2] sm:$0xf] %vm38_vm1, %v359_v39 }

// kernel: _forward.5
= control target key start
LH: loop header
LB: loop body
LE: loop exit
PB: predicated region body
PF: predicated region fallthrough
CT: control target
= control target key end

     0   :  { %vm32_vm0 = vcmask 1043456   ;;  %vm28_vm1 = vcmask 31744   ;;  %v586_v0 = vmov 0.0   ;;  %vm587_vm2 = vmmov 0   ;;  %s692_s3 = inlined_call_operand.vmem [shape: f32[1,4,4], index: 3, kind: input, shape index: {}]   ;;  %s693_s1 = inlined_call_operand.vmem [shape: f32[8,4], index: 1, kind: input, shape index: {}]   ;;  %s694_s2 = inlined_call_operand.vmem [shape: f32[1,4,1], index: 2, kind: input, shape index: {}]   ;;  %s695_s0 = inlined_call_operand.vmem [shape: f32[4,1024], index: 0, kind: input, shape index: {}]   ;;  %s696_s4 = inlined_call_operand.vmem [shape: f32[8,1], index: 4, kind: input, shape index: {}]   ;;  %s697_s5 = inlined_call_operand.vmem [shape: f32[8,1], index: 5, kind: input, shape index: {}]   ;;  %s698_s6 = inlined_call_operand.vmem [shape: f32[8,1024], index: 6, kind: output, shape index: {}]  }
   0x1   :  { %570 = vmatprep.subr.mxu1 %v586_v0  ;;  %v26_v1 = vld [vmem:[%s692_s3] sm:$0xf]  ;;  %572 = vmatprep.mubr.msk.f32.mxu1 %vm587_vm2, %v586_v0  ;;  %v196_v5 = vld [vmem:[%s695_s0 + $0x8] sm:$0xff]  ;;  %v197_v6 = vld [vmem:[%s695_s0 + $0x10] sm:$0xff]  ;;  %v588_v18 = vmov 0  }
   0x2   :  { %v23_v2 = vld [vmem:[%s693_s1] sm:$0xff]  ;;  %571 = vmatpush3.msk.msra.mxu1 %vm32_vm0, %v26_v1  ;;  %565 = vmatprep.subr.mxu0 %v586_v0  ;;  %v204_v8 = vcombine.high %v196_v5, %v196_v5  ;;  %v198_v9 = vld [vmem:[%s695_s0 + $0x18] sm:$0xff]  ;;  %v205_v10 = vcombine.high %v197_v6, %v197_v6 }
   0x3   :  { %v24_v3 = vld [vmem:[%s694_s2] sm:$0xf]  ;;  %573 = vmatmul.mubr.msk.f32.vlgmr.msra.gmra.mrb[0].mxu1 %vm28_vm1, %v23_v2  ;;  %567 = vmatprep.mubr.msk.f32.mxu0 %vm587_vm2, %v586_v0  ;;  %v206_v11 = vcombine.high %v198_v9, %v198_v9 }
   0x4   :  { %566 = vmatpush3.msk.msra.mxu0 %vm32_vm0, %v24_v3  ;;  %358 = vmatprep.mubr.f32.mxu1 %v586_v0  ;;  %v195_v4 = vld [vmem:[%s695_s0] sm:$0xff] }
   0x5   :  { %568 = vmatmul.mubr.msk.f32.vlgmr.msra.gmra.mrb[0].mxu0 %vm28_vm1, %v23_v2  ;;  %v203_v7 = vcombine.high %v195_v4, %v195_v4  ;;  %552 = vmatprep.subr.msk.mxu1 %vm32_vm0, %v204_v8  ;;  %v188_v32 = vld [vmem:[%s696_s4] sm:$0xff] }
   0x6   :  { %287 = vmatprep.mubr.f32.mxu0 %v586_v0  ;;  %553 = vmatpush1.msk.msra.mxu1 %vm32_vm0, %v196_v5  ;;  %v192_v35 = vld [vmem:[%s697_s5] sm:$0xff] }
   0x7   :  { %549 = vmatprep.subr.msk.mxu0 %vm32_vm0, %v203_v7  ;;  %554 = vmatmul.mubr.msk.f32.vlgmr.msra.gmra.mrb[2].mxu1 %vm28_vm1, %v23_v2 }
   0x8   :  { %550 = vmatpush1.msk.msra.mxu0 %vm32_vm0, %v195_v4  ;;  %558 = vmatprep.subr.msk.mxu1 %vm32_vm0, %v206_v11 }
   0x9   :  { %551 = vmatmul.mubr.msk.f32.vlgmr.msra.gmra.mrb[2].mxu0 %vm28_vm1, %v23_v2  ;;  %555 = vmatprep.subr.msk.mxu0 %vm32_vm0, %v205_v10 }
   0xa   :  { %556 = vmatpush1.msk.msra.mxu0 %vm32_vm0, %v197_v6  ;;  %559 = vmatpush1.msk.msra.mxu1 %vm32_vm0, %v198_v9 }
   0xb   :  { %429 = vmatprep.mubr.f32.mxu0 %v586_v0  ;;  %500 = vmatprep.mubr.f32.mxu1 %v586_v0 }
   0xc   :  { %560 = vmatmul.mubr.msk.f32.vlgmr.msra.gmra.mrb[4].mxu1 %vm28_vm1, %v23_v2  ;;  %578 = vset.pattern.permute.xlu0 %v588_v18 }
   0xd   :  { %557 = vmatmul.mubr.msk.f32.vlgmr.msra.gmra.mrb[4].mxu0 %vm28_vm1, %v23_v2  ;;  %579 = vset.pattern.permute.xlu1 %v588_v18 }
  0xd6   :  { %v176_v12 = vpop.f32.mrb[0].mxu1 }
  0xd7   :  { %v180_v13 = vmul.f32 %v176_v12, %v23_v2  ;;  %v574_v14 = vpop.f32.mrb[1].mxu1 }
  0xd8   :  { %v102_v15 = vpop.f32.mrb[0].mxu0 }
  0xd9   :  { %v181_v16 = vsel %vm28_vm1, %v180_v13, 0.0  ;;  %v569_v17 = vpop.f32.mrb[1].mxu0  ;;  %v106_v25 = vmul.f32 0.0009765625, %v102_v15 }
  0xda   :  { %182 = vadd.xlane.f32.xlu0 %v181_v16  ;;  %v360_v20 = vpop.f32.mrb[2].mxu1 }
  0xdb   :  { %v362_v22 = vpop.f32.mrb[3].mxu1  ;;  %v185_v26 = vmul.f32 %v106_v25, %v106_v25 }
  0xdc   :  { %v289_v19 = vpop.f32.mrb[2].mxu0 }
  0xdd   :  { %v291_v21 = vpop.f32.mrb[3].mxu0 }
  0xdf   :  { %v502_v24 = vpop.f32.mrb[4].mxu1 }
  0xe0   :  { %v431_v23 = vpop.f32.mrb[4].mxu0  ;;  %v504_v38 = vpop.f32.mrb[5].mxu1 }
  0xe1   :  { %v433_v37 = vpop.f32.mrb[5].mxu0 }
 0x167   :  { %v183_v27 = vpop.xlane.xlu0 %182 }
 0x168   :  { %v184_v28 = vmul.f32 0.0009765625, %v183_v27 }
 0x16a   :  { %v186_v29 = vsub.f32 %v184_v28, %v185_v26 }
 0x16c   :  { %v187_v30 = vmax.f32 %v186_v29, 0.0 }
 0x16e   :  { %v189_v31 = vadd.f32 1e-05, %v187_v30 }
 0x170   :  { %584 = vrsqrt.f32 %v189_v31 }
 0x17a   :  { %v585_v33 = vpop.eup %584 }
 0x17b   :  { %v191_v34 = vmul.f32 %v585_v33, %v188_v32 }
 0x17d   :  { %509 = vperm.xlu0 %578, %v191_v34   ;;  %v193_v36 = vmul.f32 %v191_v34, %v106_v25 }
 0x17f   :  { %v194_v39 = vsub.f32 %v192_v35, %v193_v36 }
 0x181   :  { %522 = vperm.xlu1 %579, %v194_v39  }
 0x1fc   :  { %v510_v40 = vpop.permute.xlu0 %509 }
 0x1fd   :  { %v512_v41 = vmul.f32 %v510_v40, %v289_v19  ;;  %v513_v42 = vmul.f32 %v510_v40, %v291_v21  ;;  %v514_v43 = vmul.f32 %v510_v40, %v360_v20  ;;  %v515_v44 = vmul.f32 %v510_v40, %v362_v22 }
 0x1fe   :  { %v516_v45 = vmul.f32 %v510_v40, %v431_v23  ;;  %v518_v46 = vmul.f32 %v510_v40, %v502_v24  ;;  %v517_v47 = vmul.f32 %v510_v40, %v433_v37  ;;  %v519_v48 = vmul.f32 %v510_v40, %v504_v38 }
 0x200   :  { %v523_v49 = vpop.permute.xlu1 %522 }
 0x201   :  { %v525_v50 = vadd.f32 %v523_v49, %v512_v41  ;;  %v526_v51 = vadd.f32 %v523_v49, %v513_v42  ;;  %v527_v52 = vadd.f32 %v523_v49, %v514_v43  ;;  %v528_v53 = vadd.f32 %v523_v49, %v515_v44 }
 0x202   :  { %v529_v54 = vadd.f32 %v523_v49, %v516_v45  ;;  %v530_v55 = vadd.f32 %v523_v49, %v517_v47  ;;  %v531_v56 = vadd.f32 %v523_v49, %v518_v46  ;;  %v532_v57 = vadd.f32 %v523_v49, %v519_v48 }
 0x203   :  { %533 = vst [vmem:[%s698_s6] sm:$0xff] %v525_v50  ;;  %534 = vst [vmem:[%s698_s6 + $0x8] sm:$0xff] %v526_v51 }
 0x204   :  { %535 = vst [vmem:[%s698_s6 + $0x10] sm:$0xff] %v527_v52  ;;  %536 = vst [vmem:[%s698_s6 + $0x18] sm:$0xff] %v528_v53 }
 0x205   :  { %537 = vst [vmem:[%s698_s6 + $0x20] sm:$0xff] %v529_v54  ;;  %538 = vst [vmem:[%s698_s6 + $0x28] sm:$0xff] %v530_v55 }
 0x206   :  { %539 = vst [vmem:[%s698_s6 + $0x30] sm:$0xff] %v531_v56  ;;  %540 = vst [vmem:[%s698_s6 + $0x38] sm:$0xff] %v532_v57 }

// kernel: _forward.7
= control target key start
LH: loop header
LB: loop body
LE: loop exit
PB: predicated region body
PF: predicated region fallthrough
CT: control target
= control target key end

     0   :  { %vm32_vm0 = vcmask 1045504   ;;  %vm28_vm1 = vcmask 48128   ;;  %v586_v0 = vmov 0.0   ;;  %vm587_vm2 = vmmov 0   ;;  %s704_s3 = inlined_call_operand.vmem [shape: f32[1,6,6], index: 3, kind: input, shape index: {}]   ;;  %s705_s1 = inlined_call_operand.vmem [shape: f32[8,6], index: 1, kind: input, shape index: {}]   ;;  %s706_s2 = inlined_call_operand.vmem [shape: f32[1,6,1], index: 2, kind: input, shape index: {}]   ;;  %s707_s0 = inlined_call_operand.vmem [shape: f32[6,1024], index: 0, kind: input, shape index: {}]   ;;  %s708_s4 = inlined_call_operand.vmem [shape: f32[8,1], index: 4, kind: input, shape index: {}]   ;;  %s709_s5 = inlined_call_operand.vmem [shape: f32[8,1], index: 5, kind: input, shape index: {}]   ;;  %s710_s6 = inlined_call_operand.vmem [shape: f32[8,1024], index: 6, kind: output, shape index: {}]  }
   0x1   :  { %574 = vmatprep.subr.mxu1 %v586_v0  ;;  %v26_v1 = vld [vmem:[%s704_s3] sm:$0x3f]  ;;  %576 = vmatprep.mubr.msk.f32.mxu1 %vm587_vm2, %v586_v0  ;;  %v196_v4 = vld [vmem:[%s707_s0 + $0x8] sm:$0x3f]  ;;  %v198_v5 = vld [vmem:[%s707_s0 + $0x18] sm:$0x3f] }
   0x2   :  { %v23_v2 = vld [vmem:[%s705_s1] sm:$0xff]  ;;  %575 = vmatpush3.msk.msra.mxu1 %vm32_vm0, %v26_v1  ;;  %569 = vmatprep.subr.mxu0 %v586_v0  ;;  %v197_v7 = vld [vmem:[%s707_s0 + $0x10] sm:$0x3f]  ;;  %v200_v8 = vld [vmem:[%s707_s0 + $0x28] sm:$0x3f]  ;;  %v588_v18 = vmov 0  }
   0x3   :  { %v24_v3 = vld [vmem:[%s706_s2] sm:$0x3f]  ;;  %577 = vmatmul.mubr.msk.f32.vlgmr.msra.gmra.mrb[0].mxu1 %vm28_vm1, %v23_v2  ;;  %571 = vmatprep.mubr.msk.f32.mxu0 %vm587_vm2, %v586_v0  ;;  %v202_v9 = vld [vmem:[%s707_s0 + $0x38] sm:$0x3f]  ;;  %v201_v11 = vld [vmem:[%s707_s0 + $0x30] sm:$0x3f] }
   0x4   :  { %570 = vmatpush3.msk.msra.mxu0 %vm32_vm0, %v24_v3  ;;  %362 = vmatprep.mubr.f32.mxu1 %v586_v0  ;;  %v195_v6 = vld [vmem:[%s707_s0] sm:$0x3f] }
   0x5   :  { %572 = vmatmul.mubr.msk.f32.vlgmr.msra.gmra.mrb[0].mxu0 %vm28_vm1, %v23_v2  ;;  %553 = vmatprep.subr.msk.mxu0 %vm32_vm0, %v196_v4  ;;  %v199_v10 = vld [vmem:[%s707_s0 + $0x20] sm:$0x3f] }
   0x6   :  { %291 = vmatprep.mubr.f32.mxu0 %v586_v0  ;;  %556 = vmatprep.subr.msk.mxu1 %vm32_vm0, %v198_v5  ;;  %v188_v32 = vld [vmem:[%s708_s4] sm:$0xff] }
   0x7   :  { %554 = vmatpush1.msk.msra.mxu0 %vm32_vm0, %v195_v6  ;;  %557 = vmatpush1.msk.msra.mxu1 %vm32_vm0, %v197_v7  ;;  %v192_v35 = vld [vmem:[%s709_s5] sm:$0xff] }
   0x8   :  { %558 = vmatmul.mubr.msk.f32.vlgmr.msra.gmra.mrb[2].mxu1 %vm28_vm1, %v23_v2  ;;  %559 = vmatprep.subr.msk.mxu0 %vm32_vm0, %v200_v8 }
   0x9   :  { %555 = vmatmul.mubr.msk.f32.vlgmr.msra.gmra.mrb[2].mxu0 %vm28_vm1, %v23_v2  ;;  %562 = vmatprep.subr.msk.mxu1 %vm32_vm0, %v202_v9 }
   0xa   :  { %560 = vmatpush1.msk.msra.mxu0 %vm32_vm0, %v199_v10  ;;  %563 = vmatpush1.msk.msra.mxu1 %vm32_vm0, %v201_v11 }
   0xb   :  { %433 = vmatprep.mubr.f32.mxu0 %v586_v0  ;;  %504 = vmatprep.mubr.f32.mxu1 %v586_v0 }
   0xc   :  { %564 = vmatmul.mubr.msk.f32.vlgmr.msra.gmra.mrb[4].mxu1 %vm28_vm1, %v23_v2  ;;  %582 = vset.pattern.permute.xlu0 %v588_v18 }
   0xd   :  { %561 = vmatmul.mubr.msk.f32.vlgmr.msra.gmra.mrb[4].mxu0 %vm28_vm1, %v23_v2  ;;  %583 = vset.pattern.permute.xlu1 %v588_v18 }
  0xd6   :  { %v176_v12 = vpop.f32.mrb[0].mxu1 }
  0xd7   :  { %v180_v13 = vmul.f32 %v176_v12, %v23_v2  ;;  %v578_v14 = vpop.f32.mrb[1].mxu1 }
  0xd8   :  { %v102_v15 = vpop.f32.mrb[0].mxu0 }
  0xd9   :  { %v181_v16 = vsel %vm28_vm1, %v180_v13, 0.0  ;;  %v573_v17 = vpop.f32.mrb[1].mxu0  ;;  %v106_v25 = vmul.f32 0.0009765625, %v102_v15 }
  0xda   :  { %182 = vadd.xlane.f32.xlu0 %v181_v16 }
  0xdb   :  { %v364_v20 = vpop.f32.mrb[2].mxu1  ;;  %v185_v26 = vmul.f32 %v106_v25, %v106_v25 }
  0xdc   :  { %v293_v19 = vpop.f32.mrb[2].mxu0  ;;  %v366_v22 = vpop.f32.mrb[3].mxu1 }
  0xdd   :  { %v295_v21 = vpop.f32.mrb[3].mxu0 }
  0xdf   :  { %v506_v24 = vpop.f32.mrb[4].mxu1 }
  0xe0   :  { %v435_v23 = vpop.f32.mrb[4].mxu0  ;;  %v508_v38 = vpop.f32.mrb[5].mxu1 }
  0xe1   :  { %v437_v37 = vpop.f32.mrb[5].mxu0 }
 0x167   :  { %v183_v27 = vpop.xlane.xlu0 %182 }
 0x168   :  { %v184_v28 = vmul.f32 0.0009765625, %v183_v27 }
 0x16a   :  { %v186_v29 = vsub.f32 %v184_v28, %v185_v26 }
 0x16c   :  { %v187_v30 = vmax.f32 %v186_v29, 0.0 }
 0x16e   :  { %v189_v31 = vadd.f32 1e-05, %v187_v30 }
 0x170   :  { %584 = vrsqrt.f32 %v189_v31 }
 0x17a   :  { %v585_v33 = vpop.eup %584 }
 0x17b   :  { %v191_v34 = vmul.f32 %v585_v33, %v188_v32 }
 0x17d   :  { %513 = vperm.xlu0 %582, %v191_v34   ;;  %v193_v36 = vmul.f32 %v191_v34, %v106_v25 }
 0x17f   :  { %v194_v39 = vsub.f32 %v192_v35, %v193_v36 }
 0x181   :  { %526 = vperm.xlu1 %583, %v194_v39  }
 0x1fc   :  { %v514_v40 = vpop.permute.xlu0 %513 }
 0x1fd   :  { %v516_v41 = vmul.f32 %v514_v40, %v293_v19  ;;  %v517_v42 = vmul.f32 %v514_v40, %v295_v21  ;;  %v518_v43 = vmul.f32 %v514_v40, %v364_v20  ;;  %v519_v44 = vmul.f32 %v514_v40, %v366_v22 }
 0x1fe   :  { %v520_v45 = vmul.f32 %v514_v40, %v435_v23  ;;  %v522_v46 = vmul.f32 %v514_v40, %v506_v24  ;;  %v521_v47 = vmul.f32 %v514_v40, %v437_v37  ;;  %v523_v48 = vmul.f32 %v514_v40, %v508_v38 }
 0x200   :  { %v527_v49 = vpop.permute.xlu1 %526 }
 0x201   :  { %v529_v50 = vadd.f32 %v527_v49, %v516_v41  ;;  %v530_v51 = vadd.f32 %v527_v49, %v517_v42  ;;  %v531_v52 = vadd.f32 %v527_v49, %v518_v43  ;;  %v532_v53 = vadd.f32 %v527_v49, %v519_v44 }
 0x202   :  { %v533_v54 = vadd.f32 %v527_v49, %v520_v45  ;;  %v534_v55 = vadd.f32 %v527_v49, %v521_v47  ;;  %v535_v56 = vadd.f32 %v527_v49, %v522_v46  ;;  %v536_v57 = vadd.f32 %v527_v49, %v523_v48 }
 0x203   :  { %537 = vst [vmem:[%s710_s6] sm:$0xff] %v529_v50  ;;  %538 = vst [vmem:[%s710_s6 + $0x8] sm:$0xff] %v530_v51 }
 0x204   :  { %539 = vst [vmem:[%s710_s6 + $0x10] sm:$0xff] %v531_v52  ;;  %540 = vst [vmem:[%s710_s6 + $0x18] sm:$0xff] %v532_v53 }
 0x205   :  { %541 = vst [vmem:[%s710_s6 + $0x20] sm:$0xff] %v533_v54  ;;  %542 = vst [vmem:[%s710_s6 + $0x28] sm:$0xff] %v534_v55 }
 0x206   :  { %543 = vst [vmem:[%s710_s6 + $0x30] sm:$0xff] %v535_v56  ;;  %544 = vst [vmem:[%s710_s6 + $0x38] sm:$0xff] %v536_v57 }

</bundles_post_ra>
